<compile_context>
chip_gen: v6e
topology: v6e:2x2x1
jax: 0.10.0
libtpu: 0.0.40
codegen_flags: <defaults>
</compile_context>

<pallas_src>
import functools

import numpy as np
import jax
import jax.numpy as jnp
from jax.experimental import pallas as pl
from jax.experimental.pallas import tpu as pltpu
from jax.scipy.linalg import block_diag

BIAS_INITIAL_VALUE = 0.1
CLAMP_EPSILON = 1e-6


# -----------------------------------------------------------------------------
# Parameter initialization (deterministic, mirrors the PyTorch __init__).
# Weights are stored transposed vs PyTorch: (in_features, out_features).
# -----------------------------------------------------------------------------
def _kaiming_normal(key, fan_in, fan_out):
    std = (2.0 / fan_in) ** 0.5
    return std * jax.random.normal(key, (fan_in, fan_out), jnp.float32)


def _xavier_normal(key, fan_in, fan_out):
    std = (2.0 / (fan_in + fan_out)) ** 0.5
    return std * jax.random.normal(key, (fan_in, fan_out), jnp.float32)


def init_debnet_params(key, n_inputs, shared_hidden_layers, par_hidden_layers,
                       n_outputs, use_skip_connection=True):
    params = {"shared": [], "heads": []}
    prev = n_inputs
    for hidden in shared_hidden_layers:
        key, k = jax.random.split(key)
        w = _kaiming_normal(k, prev, hidden)
        b = jnp.full((1, hidden), BIAS_INITIAL_VALUE, jnp.float32)
        params["shared"].append((w, b))
        prev = hidden

    shared_out_dim = shared_hidden_layers[-1]
    skip_dim = shared_out_dim + (n_inputs if use_skip_connection else 0)
    for _ in range(n_outputs):
        head = []
        prev = skip_dim
        for hidden in par_hidden_layers:
            key, k = jax.random.split(key)
            w = _kaiming_normal(k, prev, hidden)
            b = jnp.full((1, hidden), BIAS_INITIAL_VALUE, jnp.float32)
            head.append((w, b))
            prev = hidden
        key, k = jax.random.split(key)
        w_out = _xavier_normal(k, prev, 1)
        b_out = jnp.full((1, 1), BIAS_INITIAL_VALUE, jnp.float32)
        head.append((w_out, b_out))
        params["heads"].append(head)
    return params


# -----------------------------------------------------------------------------
# Fused kernel
# -----------------------------------------------------------------------------
def _make_debnethc_kernel(n_shared, n_mid, use_skip, head_has_hidden,
                          apply_clamp):
    def kernel(*refs):
        out_ref = refs[-1]
        idx = 0

        x = refs[idx][...]          # (TILE_B, n_inputs) bf16
        idx += 1

        # ---- shared trunk: Linear -> ReLU (Dropout = identity in eval mode)
        h = x
        for _ in range(n_shared):
            w = refs[idx][...]      # bf16 (d_in, d_out)
            b = refs[idx + 1][...]  # f32  (1, d_out)
            idx += 2
            acc = jnp.dot(h, w, preferred_element_type=jnp.float32) + b
            h = jnp.maximum(acc, 0.0).astype(jnp.bfloat16)  # epilogue in f32

        # ---- fused first head layer for ALL heads at once.
        # concat([h, x]) @ W0_all  ==  h @ Wa_all + x @ Wb_all
        wa = refs[idx][...]
        idx += 1
        if use_skip:
            wb = refs[idx][...]
            idx += 1
        b1 = refs[idx][...]
        idx += 1
        z = jnp.dot(h, wa, preferred_element_type=jnp.float32) + b1
        if use_skip:
            z = z + jnp.dot(x, wb, preferred_element_type=jnp.float32)
        if head_has_hidden:
            z = jnp.maximum(z, 0.0)

        # ---- deeper parallel hidden layers (block-diagonal packed weights)
        for _ in range(n_mid):
            w = refs[idx][...]
            b = refs[idx + 1][...]
            idx += 2
            z = jnp.dot(z.astype(jnp.bfloat16), w,
                        preferred_element_type=jnp.float32) + b
            z = jnp.maximum(z, 0.0)

        # ---- final per-head Linear(prev, 1) packed into one (H*d, H) matmul
        if head_has_hidden:
            w_out = refs[idx][...]
            b_out = refs[idx + 1][...]
            idx += 2
            y = jnp.dot(z.astype(jnp.bfloat16), w_out,
                        preferred_element_type=jnp.float32) + b_out
        else:
            y = z  # first fused layer already was the final layer

        # ---- LogScaleOutputClamp (logsigmoid variant) on bounded columns
        if apply_clamp:
            mask = refs[idx][...]   # (1, n_heads) f32 {0, 1}
            ub = refs[idx + 1][...]  # (1, n_heads) f32
            idx += 2
            log_sig = jnp.minimum(y, 0.0) - jnp.log(1.0 + jnp.exp(-jnp.abs(y)))
            y = jnp.where(mask > 0.5, ub + log_sig - CLAMP_EPSILON, y)

        out_ref[...] = y.astype(out_ref.dtype)

    return kernel


def _round_up(n, m):
    return ((n + m - 1) // m) * m


def debnethc_forward(params, x, *, use_skip_connection=True,
                     clamp_col_idx=(), clamp_upper_bounds=(), tile_b=512):
    """Fused DEBNetHC forward.  x: (B, n_inputs) f32 -> (B, n_outputs) f32."""
    B, n_inputs = x.shape
    n_heads = len(params["heads"])
    shared_dim = params["shared"][-1][0].shape[1]
    n_par_hidden = len(params["heads"][0]) - 1       # number of hidden head layers
    head_has_hidden = n_par_hidden >= 1
    n_mid = max(n_par_hidden - 1, 0)
    apply_clamp = len(clamp_col_idx) > 0

    # Batch tiling: large tiles, padded so the grid divides evenly.
    tile_b = min(tile_b, _round_up(B, 8))
    b_pad = _round_up(B, tile_b)
    x_p = jnp.pad(x, ((0, b_pad - B), (0, 0))) if b_pad != B else x

    bf16 = lambda a: a.astype(jnp.bfloat16)

    flat = [bf16(x_p)]
    specs = [pl.BlockSpec((tile_b, n_inputs), lambda i: (i, 0))]

    def add_resident(a):  # weight/bias: full array, resident across the grid
        flat.append(a)
        specs.append(pl.BlockSpec(a.shape, lambda i: (0, 0)))

    for w, b in params["shared"]:
        add_resident(bf16(w))
        add_resident(b)

    heads = params["heads"]
    w0s = [h[0][0] for h in heads]
    b0s = [h[0][1] for h in heads]
    add_resident(bf16(jnp.concatenate([w[:shared_dim] for w in w0s], axis=1)))
    if use_skip_connection:
        add_resident(bf16(jnp.concatenate([w[shared_dim:] for w in w0s], axis=1)))
    add_resident(jnp.concatenate(b0s, axis=1))

    if head_has_hidden:
        for li in range(1, n_par_hidden):
            add_resident(bf16(block_diag(*[h[li][0] for h in heads])))
            add_resident(jnp.concatenate([h[li][1] for h in heads], axis=1))
        add_resident(bf16(block_diag(*[h[-1][0] for h in heads])))
        add_resident(jnp.concatenate([h[-1][1] for h in heads], axis=1))

    if apply_clamp:
        mask_np = np.zeros((1, n_heads), np.float32)
        ub_np = np.zeros((1, n_heads), np.float32)
        for i, c in enumerate(clamp_col_idx):
            mask_np[0, c] = 1.0
            ub_np[0, c] = float(clamp_upper_bounds[i])
        add_resident(jnp.asarray(mask_np))
        add_resident(jnp.asarray(ub_np))

    kernel = _make_debnethc_kernel(
        n_shared=len(params["shared"]), n_mid=n_mid,
        use_skip=use_skip_connection, head_has_hidden=head_has_hidden,
        apply_clamp=apply_clamp)

    out = pl.pallas_call(
        kernel,
        grid=(b_pad // tile_b,),
        in_specs=specs,
        out_specs=pl.BlockSpec((tile_b, n_heads), lambda i: (i, 0)),
        out_shape=jax.ShapeDtypeStruct((b_pad, n_heads), jnp.float32),
        compiler_params=pltpu.CompilerParams(
            dimension_semantics=("parallel",)),
    )(*flat)

    return out[:B]


# -----------------------------------------------------------------------------
# Pure-JAX reference (per-head math, emulating the kernel's bf16 rounding
# points so the comparison is tight).
# -----------------------------------------------------------------------------
def debnethc_reference(params, x, use_skip_connection, clamp_col_idx,
                       clamp_upper_bounds):
    cast = lambda a: a.astype(jnp.bfloat16).astype(jnp.float32)
    xc = cast(x)
    h = xc
    for w, b in params["shared"]:
        h = jnp.maximum(jnp.dot(cast(h), cast(w)) + b, 0.0)
    inp = jnp.concatenate([h, xc], axis=1) if use_skip_connection else h
    outs = []
    for head in params["heads"]:
        z = inp
        for w, b in head[:-1]:
            z = jnp.maximum(jnp.dot(cast(z), cast(w)) + b, 0.0)
        w, b = head[-1]
        z = jnp.dot(cast(z), cast(w)) + b
        outs.append(z[:, 0])
    y = jnp.stack(outs, axis=-1)
    if len(clamp_col_idx):
        idxs = jnp.array(clamp_col_idx)
        ub = jnp.asarray(clamp_upper_bounds, jnp.float32)
        col = y[:, idxs]
        log_sig = jnp.minimum(col, 0.0) - jnp.log(1.0 + jnp.exp(-jnp.abs(col)))
        y = y.at[:, idxs].set(ub + log_sig - CLAMP_EPSILON)
    return y


if __name__ == "__main__":
    # Small, forward-consistent shapes.
    batch = 16
    n_inputs = 8
    shared_hidden_layers = [32, 32]
    par_hidden_layers = [16]
    n_outputs = 3
    use_skip_connection = True

    # DEBNetHC clamp setup: columns 0 and 2 are bounded01 & log outputs.
    # upper_bound(model scale) = (log(upper_bound_par_scale) - mean) / std
    UPPER_BOUNDS = {"y0": 5.0, "y2": 2.0}
    output_cols = ["y0", "y1", "y2"]
    out_mean = np.array([0.3, 0.0, -0.1], np.float64)
    out_std = np.array([1.2, 1.0, 0.8], np.float64)
    log_bounded_idx = (0, 2)
    upper_bounds = tuple(
        float((np.log(UPPER_BOUNDS[output_cols[i]]) - out_mean[i]) / out_std[i])
        for i in log_bounded_idx)

    key = jax.random.PRNGKey(0)
    key, pkey, xkey = jax.random.split(key, 3)
    params = init_debnet_params(pkey, n_inputs, shared_hidden_layers,
                                par_hidden_layers, n_outputs,
                                use_skip_connection)
    x = jax.random.normal(xkey, (batch, n_inputs), jnp.float32)

    fwd = jax.jit(functools.partial(
        debnethc_forward,
        use_skip_connection=use_skip_connection,
        clamp_col_idx=log_bounded_idx,
        clamp_upper_bounds=upper_bounds))

    y = fwd(params, x)
    jax.block_until_ready(y)

    y_ref = debnethc_reference(params, x, use_skip_connection,
                               log_bounded_idx, upper_bounds)
    assert y.shape == (batch, n_outputs), y.shape
    assert jnp.allclose(y, y_ref, atol=1e-3, rtol=1e-3), (y, y_ref)

    print("KERNEL_OK")
</pallas_src>

<mosaic_0001>
module attributes {stable_mosaic.version = 11 : i64} {
  func.func @kernel(%arg0: i32, %arg1: memref<16x8xbf16, #tpu.memory_space<vmem>>, %arg2: memref<8x32xbf16, #tpu.memory_space<vmem>>, %arg3: memref<1x32xf32, #tpu.memory_space<vmem>>, %arg4: memref<32x32xbf16, #tpu.memory_space<vmem>>, %arg5: memref<1x32xf32, #tpu.memory_space<vmem>>, %arg6: memref<32x48xbf16, #tpu.memory_space<vmem>>, %arg7: memref<8x48xbf16, #tpu.memory_space<vmem>>, %arg8: memref<1x48xf32, #tpu.memory_space<vmem>>, %arg9: memref<48x3xbf16, #tpu.memory_space<vmem>>, %arg10: memref<1x3xf32, #tpu.memory_space<vmem>>, %arg11: memref<1x3xf32, #tpu.memory_space<vmem>>, %arg12: memref<1x3xf32, #tpu.memory_space<vmem>>, %arg13: memref<16x3xf32, #tpu.memory_space<vmem>>) attributes {dimension_semantics = [#tpu.dimension_semantics<parallel>], iteration_bounds = array<i64: 1>, scalar_prefetch = 0 : i64, scratch_operands = 0 : i64, tpu.core_type = #tpu.core_type<tc>, window_params = [{transform_indices = @transform_0, window_bounds = array<i64: 16, 8>}, {pipeline_mode = #tpu.pipeline_mode<synchronous>, transform_indices = @transform_1, window_bounds = array<i64: 8, 32>}, {pipeline_mode = #tpu.pipeline_mode<synchronous>, transform_indices = @transform_2, window_bounds = array<i64: 1, 32>}, {pipeline_mode = #tpu.pipeline_mode<synchronous>, transform_indices = @transform_3, window_bounds = array<i64: 32, 32>}, {pipeline_mode = #tpu.pipeline_mode<synchronous>, transform_indices = @transform_4, window_bounds = array<i64: 1, 32>}, {pipeline_mode = #tpu.pipeline_mode<synchronous>, transform_indices = @transform_5, window_bounds = array<i64: 32, 48>}, {pipeline_mode = #tpu.pipeline_mode<synchronous>, transform_indices = @transform_6, window_bounds = array<i64: 8, 48>}, {pipeline_mode = #tpu.pipeline_mode<synchronous>, transform_indices = @transform_7, window_bounds = array<i64: 1, 48>}, {pipeline_mode = #tpu.pipeline_mode<synchronous>, transform_indices = @transform_8, window_bounds = array<i64: 48, 3>}, {pipeline_mode = #tpu.pipeline_mode<synchronous>, transform_indices = @transform_9, window_bounds = array<i64: 1, 3>}, {pipeline_mode = #tpu.pipeline_mode<synchronous>, transform_indices = @transform_10, window_bounds = array<i64: 1, 3>}, {pipeline_mode = #tpu.pipeline_mode<synchronous>, transform_indices = @transform_11, window_bounds = array<i64: 1, 3>}, {transform_indices = @transform_12, window_bounds = array<i64: 16, 3>}]} {
    %c0 = arith.constant 0 : index
    %c0_0 = arith.constant 0 : index
    %0 = vector.load %arg1[%c0, %c0_0] : memref<16x8xbf16, #tpu.memory_space<vmem>>, vector<16x8xbf16>
    %c0_1 = arith.constant 0 : index
    %c0_2 = arith.constant 0 : index
    %1 = vector.load %arg2[%c0_1, %c0_2] : memref<8x32xbf16, #tpu.memory_space<vmem>>, vector<8x32xbf16>
    %c0_3 = arith.constant 0 : index
    %c0_4 = arith.constant 0 : index
    %2 = vector.load %arg3[%c0_3, %c0_4] : memref<1x32xf32, #tpu.memory_space<vmem>>, vector<1x32xf32>
    %cst = arith.constant dense<0.000000e+00> : vector<16x32xf32>
    %3 = tpu.matmul %0, %1, %cst {dimension_numbers = #tpu.dot_dimension_numbers<[1], [0], [0], [1], [0, 0, 1, 1], [], []>} : vector<16x8xbf16>, vector<8x32xbf16>, vector<16x32xf32> -> vector<16x32xf32>
    %4 = vector.broadcast %2 : vector<1x32xf32> to vector<16x32xf32>
    %5 = arith.addf %3, %4 : vector<16x32xf32>
    %cst_5 = arith.constant 0.000000e+00 : f32
    %6 = vector.broadcast %cst_5 : f32 to vector<16x32xf32>
    %7 = arith.maximumf %5, %6 : vector<16x32xf32>
    %8 = arith.truncf %7 : vector<16x32xf32> to vector<16x32xbf16>
    %c0_6 = arith.constant 0 : index
    %c0_7 = arith.constant 0 : index
    %9 = vector.load %arg4[%c0_6, %c0_7] : memref<32x32xbf16, #tpu.memory_space<vmem>>, vector<32x32xbf16>
    %c0_8 = arith.constant 0 : index
    %c0_9 = arith.constant 0 : index
    %10 = vector.load %arg5[%c0_8, %c0_9] : memref<1x32xf32, #tpu.memory_space<vmem>>, vector<1x32xf32>
    %cst_10 = arith.constant dense<0.000000e+00> : vector<16x32xf32>
    %11 = tpu.matmul %8, %9, %cst_10 {dimension_numbers = #tpu.dot_dimension_numbers<[1], [0], [0], [1], [0, 0, 1, 1], [], []>} : vector<16x32xbf16>, vector<32x32xbf16>, vector<16x32xf32> -> vector<16x32xf32>
    %12 = vector.broadcast %10 : vector<1x32xf32> to vector<16x32xf32>
    %13 = arith.addf %11, %12 : vector<16x32xf32>
    %cst_11 = arith.constant 0.000000e+00 : f32
    %14 = vector.broadcast %cst_11 : f32 to vector<16x32xf32>
    %15 = arith.maximumf %13, %14 : vector<16x32xf32>
    %16 = arith.truncf %15 : vector<16x32xf32> to vector<16x32xbf16>
    %c0_12 = arith.constant 0 : index
    %c0_13 = arith.constant 0 : index
    %17 = vector.load %arg6[%c0_12, %c0_13] : memref<32x48xbf16, #tpu.memory_space<vmem>>, vector<32x48xbf16>
    %c0_14 = arith.constant 0 : index
    %c0_15 = arith.constant 0 : index
    %18 = vector.load %arg7[%c0_14, %c0_15] : memref<8x48xbf16, #tpu.memory_space<vmem>>, vector<8x48xbf16>
    %c0_16 = arith.constant 0 : index
    %c0_17 = arith.constant 0 : index
    %19 = vector.load %arg8[%c0_16, %c0_17] : memref<1x48xf32, #tpu.memory_space<vmem>>, vector<1x48xf32>
    %cst_18 = arith.constant dense<0.000000e+00> : vector<16x48xf32>
    %20 = tpu.matmul %16, %17, %cst_18 {dimension_numbers = #tpu.dot_dimension_numbers<[1], [0], [0], [1], [0, 0, 1, 1], [], []>} : vector<16x32xbf16>, vector<32x48xbf16>, vector<16x48xf32> -> vector<16x48xf32>
    %21 = vector.broadcast %19 : vector<1x48xf32> to vector<16x48xf32>
    %22 = arith.addf %20, %21 : vector<16x48xf32>
    %cst_19 = arith.constant dense<0.000000e+00> : vector<16x48xf32>
    %23 = tpu.matmul %0, %18, %cst_19 {dimension_numbers = #tpu.dot_dimension_numbers<[1], [0], [0], [1], [0, 0, 1, 1], [], []>} : vector<16x8xbf16>, vector<8x48xbf16>, vector<16x48xf32> -> vector<16x48xf32>
    %24 = arith.addf %22, %23 : vector<16x48xf32>
    %cst_20 = arith.constant 0.000000e+00 : f32
    %25 = vector.broadcast %cst_20 : f32 to vector<16x48xf32>
    %26 = arith.maximumf %24, %25 : vector<16x48xf32>
    %c0_21 = arith.constant 0 : index
    %c0_22 = arith.constant 0 : index
    %27 = vector.load %arg9[%c0_21, %c0_22] : memref<48x3xbf16, #tpu.memory_space<vmem>>, vector<48x3xbf16>
    %c0_23 = arith.constant 0 : index
    %c0_24 = arith.constant 0 : index
    %28 = vector.load %arg10[%c0_23, %c0_24] : memref<1x3xf32, #tpu.memory_space<vmem>>, vector<1x3xf32>
    %29 = arith.truncf %26 : vector<16x48xf32> to vector<16x48xbf16>
    %cst_25 = arith.constant dense<0.000000e+00> : vector<16x3xf32>
    %30 = tpu.matmul %29, %27, %cst_25 {dimension_numbers = #tpu.dot_dimension_numbers<[1], [0], [0], [1], [0, 0, 1, 1], [], []>} : vector<16x48xbf16>, vector<48x3xbf16>, vector<16x3xf32> -> vector<16x3xf32>
    %31 = vector.broadcast %28 : vector<1x3xf32> to vector<16x3xf32>
    %32 = arith.addf %30, %31 : vector<16x3xf32>
    %c0_26 = arith.constant 0 : index
    %c0_27 = arith.constant 0 : index
    %33 = vector.load %arg11[%c0_26, %c0_27] : memref<1x3xf32, #tpu.memory_space<vmem>>, vector<1x3xf32>
    %c0_28 = arith.constant 0 : index
    %c0_29 = arith.constant 0 : index
    %34 = vector.load %arg12[%c0_28, %c0_29] : memref<1x3xf32, #tpu.memory_space<vmem>>, vector<1x3xf32>
    %cst_30 = arith.constant 0.000000e+00 : f32
    %35 = vector.broadcast %cst_30 : f32 to vector<16x3xf32>
    %36 = arith.minimumf %32, %35 : vector<16x3xf32>
    %37 = math.absf %32 : vector<16x3xf32>
    %cst_31 = arith.constant 0.000000e+00 : f32
    %38 = vector.broadcast %cst_31 : f32 to vector<16x3xf32>
    %39 = arith.subf %38, %37 : vector<16x3xf32>
    %40 = math.exp %39 : vector<16x3xf32>
    %cst_32 = arith.constant 1.000000e+00 : f32
    %41 = vector.broadcast %cst_32 : f32 to vector<16x3xf32>
    %42 = arith.addf %41, %40 : vector<16x3xf32>
    %43 = math.log %42 : vector<16x3xf32>
    %44 = arith.subf %36, %43 : vector<16x3xf32>
    %cst_33 = arith.constant 5.000000e-01 : f32
    %45 = vector.broadcast %cst_33 : f32 to vector<1x3xf32>
    %46 = arith.cmpf ogt, %33, %45 : vector<1x3xf32>
    %47 = vector.broadcast %34 : vector<1x3xf32> to vector<16x3xf32>
    %48 = arith.addf %47, %44 : vector<16x3xf32>
    %cst_34 = arith.constant 9.99999997E-7 : f32
    %49 = vector.broadcast %cst_34 : f32 to vector<16x3xf32>
    %50 = arith.subf %48, %49 : vector<16x3xf32>
    %51 = vector.shape_cast %46 : vector<1x3xi1> to vector<1x3xi1>
    %52 = vector.broadcast %51 : vector<1x3xi1> to vector<16x3xi1>
    %53 = arith.select %52, %50, %32 : vector<16x3xi1>, vector<16x3xf32>
    %c0_35 = arith.constant 0 : index
    %c0_36 = arith.constant 0 : index
    %54 = vector.load %arg13[%c0_35, %c0_36] : memref<16x3xf32, #tpu.memory_space<vmem>>, vector<16x3xf32>
    tpu.vector_store %arg13[%c0_35, %c0_36], %53 {strides = array<i32>} : memref<16x3xf32, #tpu.memory_space<vmem>>, vector<16x3xf32>,
    return
  }
  func.func @transform_0(%arg0: i32) -> (i32, i32) {
    %c0_i32 = arith.constant 0 : i32
    %c0_i32_0 = arith.constant 0 : i32
    return %arg0, %c0_i32 : i32, i32
  }
  func.func @transform_1(%arg0: i32) -> (i32, i32) {
    %c0_i32 = arith.constant 0 : i32
    %c0_i32_0 = arith.constant 0 : i32
    %c0_i32_1 = arith.constant 0 : i32
    return %c0_i32, %c0_i32_0 : i32, i32
  }
  func.func @transform_2(%arg0: i32) -> (i32, i32) {
    %c0_i32 = arith.constant 0 : i32
    %c0_i32_0 = arith.constant 0 : i32
    %c0_i32_1 = arith.constant 0 : i32
    return %c0_i32, %c0_i32_0 : i32, i32
  }
  func.func @transform_3(%arg0: i32) -> (i32, i32) {
    %c0_i32 = arith.constant 0 : i32
    %c0_i32_0 = arith.constant 0 : i32
    %c0_i32_1 = arith.constant 0 : i32
    return %c0_i32, %c0_i32_0 : i32, i32
  }
  func.func @transform_4(%arg0: i32) -> (i32, i32) {
    %c0_i32 = arith.constant 0 : i32
    %c0_i32_0 = arith.constant 0 : i32
    %c0_i32_1 = arith.constant 0 : i32
    return %c0_i32, %c0_i32_0 : i32, i32
  }
  func.func @transform_5(%arg0: i32) -> (i32, i32) {
    %c0_i32 = arith.constant 0 : i32
    %c0_i32_0 = arith.constant 0 : i32
    %c0_i32_1 = arith.constant 0 : i32
    return %c0_i32, %c0_i32_0 : i32, i32
  }
  func.func @transform_6(%arg0: i32) -> (i32, i32) {
    %c0_i32 = arith.constant 0 : i32
    %c0_i32_0 = arith.constant 0 : i32
    %c0_i32_1 = arith.constant 0 : i32
    return %c0_i32, %c0_i32_0 : i32, i32
  }
  func.func @transform_7(%arg0: i32) -> (i32, i32) {
    %c0_i32 = arith.constant 0 : i32
    %c0_i32_0 = arith.constant 0 : i32
    %c0_i32_1 = arith.constant 0 : i32
    return %c0_i32, %c0_i32_0 : i32, i32
  }
  func.func @transform_8(%arg0: i32) -> (i32, i32) {
    %c0_i32 = arith.constant 0 : i32
    %c0_i32_0 = arith.constant 0 : i32
    %c0_i32_1 = arith.constant 0 : i32
    return %c0_i32, %c0_i32_0 : i32, i32
  }
  func.func @transform_9(%arg0: i32) -> (i32, i32) {
    %c0_i32 = arith.constant 0 : i32
    %c0_i32_0 = arith.constant 0 : i32
    %c0_i32_1 = arith.constant 0 : i32
    return %c0_i32, %c0_i32_0 : i32, i32
  }
  func.func @transform_10(%arg0: i32) -> (i32, i32) {
    %c0_i32 = arith.constant 0 : i32
    %c0_i32_0 = arith.constant 0 : i32
    %c0_i32_1 = arith.constant 0 : i32
    return %c0_i32, %c0_i32_0 : i32, i32
  }
  func.func @transform_11(%arg0: i32) -> (i32, i32) {
    %c0_i32 = arith.constant 0 : i32
    %c0_i32_0 = arith.constant 0 : i32
    %c0_i32_1 = arith.constant 0 : i32
    return %c0_i32, %c0_i32_0 : i32, i32
  }
  func.func @transform_12(%arg0: i32) -> (i32, i32) {
    %c0_i32 = arith.constant 0 : i32
    %c0_i32_0 = arith.constant 0 : i32
    return %arg0, %c0_i32 : i32, i32
  }
}

</mosaic_0001>

<bundles_post_ra>
// kernel: debnethc_forward.1
= control target key start
LH: loop header
LB: loop body
LE: loop exit
PB: predicated region body
PF: predicated region fallthrough
CT: control target
= control target key end

     0   :  { %vm61_vm0 = vcmask 1043456   ;;  %v510_v0 = vmov 0.0   ;;  %vm511_vm1 = vmmov 0   ;;  %vm57_vm2 = vcmask 64512   ;;  %s657_s1 = inlined_call_operand.vmem [shape: bf16[8,32], index: 1, kind: input, shape index: {}]   ;;  %s658_s0 = inlined_call_operand.vmem [shape: bf16[16,8], index: 0, kind: input, shape index: {}]   ;;  %s659_s3 = inlined_call_operand.vmem [shape: bf16[32,32], index: 3, kind: input, shape index: {}]   ;;  %s660_s2 = inlined_call_operand.vmem [shape: f32[1,32], index: 2, kind: input, shape index: {}]   ;;  %s661_s6 = inlined_call_operand.vmem [shape: bf16[8,48], index: 6, kind: input, shape index: {}]   ;;  %s662_s5 = inlined_call_operand.vmem [shape: bf16[32,48], index: 5, kind: input, shape index: {}]   ;;  %s663_s4 = inlined_call_operand.vmem [shape: f32[1,32], index: 4, kind: input, shape index: {}]   ;;  %s664_s8 = inlined_call_operand.vmem [shape: bf16[48,3], index: 8, kind: input, shape index: {}]   ;;  %s665_s7 = inlined_call_operand.vmem [shape: f32[1,48], index: 7, kind: input, shape index: {}]   ;;  %s666_s9 = inlined_call_operand.vmem [shape: f32[1,3], index: 9, kind: input, shape index: {}]   ;;  %s667_s10 = inlined_call_operand.vmem [shape: f32[1,3], index: 10, kind: input, shape index: {}]   ;;  %s668_s11 = inlined_call_operand.vmem [shape: f32[1,3], index: 11, kind: input, shape index: {}]   ;;  %s669_s12 = inlined_call_operand.vmem [shape: f32[16,3], index: 12, kind: output, shape index: {}]  }
   0x1   :  { %453 = vmatprep.subr.bf16.mxu1 %v510_v0  ;;  %v44_v1 = vld [vmem:[%s657_s1] sm:$0xf]  ;;  %455 = vmatprep.mubr.msk.bf16.mxu1 %vm511_vm1, %v510_v0  ;;  %v495_v4 = vld [vmem:[%s659_s3 + $0x8] sm:$0xff]   ;;  %vm132_vm3 = vcmask 261120   ;;  %v499_v33 = vld [vmem:[%s664_s8 + $0x10] sm:$0xff]   ;;  %vm328_vm4 = vcmask 392192  }
   0x2   :  { %v63_v2 = vsel %vm61_vm0, %v44_v1, 0  ;;  %v494_v3 = vld [vmem:[%s658_s0] sm:$0xff]   ;;  %467 = vmatprep.subr.bf16.mxu0 %v510_v0  ;;  %471 = vmatprep.mubr.msk.bf16.mxu0 %vm511_vm1, %v510_v0  ;;  %v497_v18 = vld [vmem:[%s662_s5 + $0x8] sm:$0xff]   ;;  %vm412_vm7 = vcmask 23552  }
   0x3   :  { %454 = vmatpush3.bf16.msra.mxu1 %v63_v2  ;;  %v496_v5 = vld [vmem:[%s659_s3] sm:$0xff]   ;;  %468 = vmatpush3.bf16.msra.mxu0 %v497_v18  ;;  %v500_v35 = vld [vmem:[%s664_s8 + $0x8] sm:$0xff]   ;;  %v405_v2 = vlaneseq }
   0x4   :  { %459 = vmatprep.subr.bf16.mxu1 %v510_v0  ;;  %v419_v6 = vld [vmem:[%s660_s2] ss:$0 sm:$0xff]  ;;  %469 = vmatprep.subr.bf16.mxu0 %v510_v0 }
   0x5   :  { %v184_v12 = vld [vmem:[%s661_s6] sm:$0xf] }
   0x6   :  { %456 = vmatmul.mubr.msk.bf16.vlgmr.msra.gmra.mxu1 %vm57_vm2, %v494_v3  ;;  %v249_v16 = vsel %vm61_vm0, %v184_v12, 0  ;;  %v498_v19 = vld [vmem:[%s662_s5] sm:$0xff]  }
   0x7   :  { %463 = vmatprep.mubr.msk.bf16.mxu1 %vm511_vm1, %v510_v0  ;;  %460 = vmatpush3.bf16.msra.mxu1 %v495_v4  ;;  %v422_v20 = vld [vmem:[%s663_s4] ss:$0 sm:$0xff]  ;;  %v406_v4 = vshrl.u32 %v405_v2, 7 }
   0x8   :  { %461 = vmatprep.subr.bf16.mxu1 %v510_v0  ;;  %470 = vmatpush3.bf16.msra.mxu0 %v498_v19  ;;  %v501_v36 = vld [vmem:[%s664_s8] sm:$0xff]  }
   0x9   :  { %481 = vmatprep.subr.bf16.mxu0 %v510_v0  ;;  %v426_v37 = vld [vmem:[%s665_s7] ss:$0 sm:$0xff] }
   0xa   :  { %v431_v49 = vld [vmem:[%s666_s9] ss:$0 sm:$0xff] }
   0xb   :  { %462 = vmatpush3.bf16.msra.mxu1 %v496_v5  ;;  %v407_v5 = vsub.s32 0, %v406_v4 }
   0xc   :  { %475 = vmatprep.subr.bf16.mxu1 %v510_v0 }
  0xc6   :  { %v99_v7 = vpop.f32.mrf.mxu1 }
  0xc7   :  { %v100_v9 = vadd.f32 %v419_v6, %v99_v7 }
  0xc8   :  { %v457_v8 = vpop.f32.mrf.mxu1 }
  0xc9   :  { %v106_v14 = vmax.f32 %v100_v9, 0.0 }
  0xca   :  { %v102_v10 = vpop.f32.mrf.mxu1 }
  0xcb   :  { %v103_v11 = vadd.f32 %v419_v6, %v102_v10  ;;  %v512_v6 = vmov 0  }
  0xcc   :  { %v458_v13 = vpop.f32.mrf.mxu1 }
  0xcd   :  { %v107_v15 = vmax.f32 %v103_v11, 0.0  ;;  %v436_v11 = vld [vmem:[%s668_s11] ss:$0 sm:$0xff] }
  0xcf   :  { %v108_v17 = vpack.c.bf16 %v107_v15, %v106_v14 }
  0xd1   :  { %464 = vmatmul.mubr.msk.bf16.vlgmr.msra.gmra.mxu1 %vm132_vm3, %v108_v17 }
  0xd2   :  { %476 = vmatpush3.bf16.msra.mxu1 %v249_v16  ;;  %477 = vmatprep.mubr.msk.bf16.mxu1 %vm511_vm1, %v510_v0 }
  0xd9   :  { %478 = vmatmul.mubr.msk.bf16.vlgmr.msra.gmra.mxu1 %vm57_vm2, %v494_v3  ;;  %v373_v3 = vld [vmem:[%s667_s10] sm:$0x1] }
  0xda   :  { %vm393_vm5 = vcmp.gt.f32.partialorder %v373_v3, 0.5 }
  0xdb   :  { %v404_v7 = vsel %vm393_vm5, 1, %v512_v6 }
  0xdc   :  { %v408_v12 = vrot.slane %v404_v7, %v407_v5 }
  0xde   :  { %vm409_vm6 = vcmp.eq.s32.totalorder %v408_v12, 1 }
 0x191   :  { %v170_v21 = vpop.f32.mrf.mxu1 }
 0x192   :  { %v171_v23 = vadd.f32 %v422_v20, %v170_v21 }
 0x193   :  { %v465_v22 = vpop.f32.mrf.mxu1 }
 0x194   :  { %v177_v27 = vmax.f32 %v171_v23, 0.0 }
 0x195   :  { %v173_v24 = vpop.f32.mrf.mxu1 }
 0x196   :  { %v174_v25 = vadd.f32 %v422_v20, %v173_v24 }
 0x197   :  { %v466_v26 = vpop.f32.mrf.mxu1 }
 0x198   :  { %v178_v28 = vmax.f32 %v174_v25, 0.0 }
 0x199   :  { %v285_v29 = vpop.f32.mrf.mxu1 }
 0x19a   :  { %v179_v30 = vpack.c.bf16 %v178_v28, %v177_v27 }
 0x19b   :  { %v479_v31 = vpop.f32.mrf.mxu1 }
 0x19c   :  { %472 = vmatmul.mubr.msk.bf16.vlgmr.msra.gmra.mxu0 %vm132_vm3, %v179_v30 }
 0x19d   :  { %487 = vmatprep.mubr.msk.bf16.mxu0 %vm511_vm1, %v510_v0  ;;  %v288_v32 = vpop.f32.mrf.mxu1  ;;  %482 = vmatpush3.bf16.msra.mxu0 %v499_v33 }
 0x19e   :  { %483 = vmatprep.subr.bf16.mxu0 %v510_v0 }
 0x19f   :  { %v480_v34 = vpop.f32.mrf.mxu1 }
 0x1a1   :  { %484 = vmatpush3.bf16.msra.mxu0 %v500_v35 }
 0x1a2   :  { %485 = vmatprep.subr.bf16.mxu0 %v510_v0 }
 0x1a5   :  { %486 = vmatpush3.bf16.msra.mxu0 %v501_v36 }
 0x25c   :  { %v241_v38 = vpop.f32.mrf.mxu0 }
 0x25d   :  { %v242_v39 = vadd.f32 %v426_v37, %v241_v38 }
 0x25e   :  { %v473_v40 = vpop.f32.mrf.mxu0 }
 0x25f   :  { %v292_v42 = vadd.f32 %v285_v29, %v242_v39 }
 0x260   :  { %v244_v41 = vpop.f32.mrf.mxu0 }
 0x261   :  { %v245_v43 = vadd.f32 %v426_v37, %v244_v41  ;;  %v294_v46 = vmax.f32 %v292_v42, 0.0 }
 0x262   :  { %v474_v44 = vpop.f32.mrf.mxu0 }
 0x263   :  { %v293_v45 = vadd.f32 %v288_v32, %v245_v43 }
 0x265   :  { %v295_v47 = vmax.f32 %v293_v45, 0.0 }
 0x267   :  { %v303_v48 = vpack.c.bf16 %v295_v47, %v294_v46 }
 0x269   :  { %488 = vmatmul.mubr.msk.bf16.vlgmr.msra.gmra.mxu0 %vm328_vm4, %v303_v48 }
 0x329   :  { %v366_v50 = vpop.f32.mrf.mxu0 }
 0x32a   :  { %v367_v51 = vadd.f32 %v431_v49, %v366_v50 }
 0x32b   :  { %v489_v52 = vpop.f32.mrf.mxu0 }
 0x32c   :  { %v377_v53 = vand.u32 2147483647, %v367_v51  ;;  %v375_v9 = vmin.f32 %v367_v51, 0.0 }
 0x32d   :  { %v369_v54 = vpop.f32.mrf.mxu0 }
 0x32e   :  { %v379_v55 = vsub.f32 0.0, %v377_v53  ;;  %v370_v56 = vadd.f32 %v431_v49, %v369_v54 }
 0x32f   :  { %v490_v57 = vpop.f32.mrf.mxu0 }
 0x330   :  { %v381_v58 = vmul.f32 1.442695, %v379_v55  ;;  %v378_v59 = vand.u32 2147483647, %v370_v56  ;;  %v376_v16 = vmin.f32 %v370_v56, 0.0 }
 0x332   :  { %502 = vpow2.f32 %v381_v58  ;;  %v380_v60 = vsub.f32 0.0, %v378_v59 }
 0x334   :  { %v383_v61 = vmul.f32 1.442695, %v380_v60 }
 0x336   :  { %504 = vpow2.f32 %v383_v61 }
 0x33f   :  { %v503_v62 = vpop.eup %502 }
 0x340   :  { %v385_v63 = vadd.f32 1.0, %v503_v62 }
 0x342   :  { %506 = vlog2.f32 %v385_v63 }
 0x343   :  { %v505_v0 = vpop.eup %504 }
 0x344   :  { %v386_v1 = vadd.f32 1.0, %v505_v0 }
 0x346   :  { %508 = vlog2.f32 %v386_v1 }
 0x34f   :  { %v507_v8 = vpop.eup %506 }
 0x350   :  { %v388_v10 = vmul.f32 0.6931472, %v507_v8 }
 0x352   :  { %v391_v13 = vsub.f32 %v375_v9, %v388_v10 }
 0x353   :  { %v509_v14 = vpop.eup %508 }
 0x354   :  { %v400_v15 = vadd.f32 %v436_v11, %v391_v13  ;;  %v390_v17 = vmul.f32 0.6931472, %v509_v14 }
 0x356   :  { %v437_v18 = vadd.f32 -1e-06, %v400_v15  ;;  %v392_v19 = vsub.f32 %v376_v16, %v390_v17 }
 0x358   :  { %v410_v20 = vsel %vm409_vm6, %v437_v18, %v367_v51  ;;  %v401_v21 = vadd.f32 %v436_v11, %v392_v19 }
 0x359   :  { %413 = vst.msk [vmem:[%s669_s12] sm:$0xff] %vm412_vm7, %v410_v20 }
 0x35a   :  { %v438_v22 = vadd.f32 -1e-06, %v401_v21 }
 0x35c   :  { %v411_v23 = vsel %vm409_vm6, %v438_v22, %v370_v56 }
 0x35d   :  { %414 = vst.msk [vmem:[%s669_s12 + $0x8] sm:$0xff] %vm412_vm7, %v411_v23 }

</bundles_post_ra>
